<compile_context>
chip_gen: v5e
topology: v5e:2x2
jax: 0.10.0
libtpu: 0.0.40
codegen_flags: <defaults>
</compile_context>

<pallas_src>
import jax
import jax.numpy as jnp
from jax.experimental import pallas as pl
from jax.experimental.pallas import tpu as pltpu

EPS = 1e-5  # torch.nn.LayerNorm default


def _ada_layer_norm_kernel(x_ref, mod_ref, o_ref):
    # x_ref: (TB, TS, D) native dtype; mod_ref: (TB, 2, D) = [1 + scale, shift].
    x = x_ref[...]
    d = x.shape[-1]
    inv_d = 1.0 / d

    # Single-sweep reduction with f32 accumulation, no full-block f32 temp.
    s = jnp.sum(x, axis=-1, keepdims=True, dtype=jnp.float32)
    sq = jnp.sum(x * x, axis=-1, keepdims=True, dtype=jnp.float32)
    mean = s * inv_d
    var = jnp.maximum(sq * inv_d - mean * mean, 0.0)  # clamp cancellation noise
    inv = jax.lax.rsqrt(var + EPS)                    # EUP slot — effectively free

    scale1 = mod_ref[:, 0:1, :]                       # (TB, 1, D), = 1 + scale
    shift = mod_ref[:, 1:2, :]                        # (TB, 1, D)
    # Fused elementwise: x promotes to f32 against mean/inv per-vreg; cast on store.
    o_ref[...] = ((x - mean) * inv * scale1 + shift).astype(o_ref.dtype)


def _choose_tiles(B, S, D, itemsize, target_block_bytes):
    """Pick (tb, ts) so the x block is ~target_block_bytes, lane-dense in D,
    sublane-aligned in S, with >= 2 parallel blocks whenever possible."""
    bytes_per_row = max(1, D * itemsize)                       # one (1, 1, D) row
    rows_per_block = max(1, target_block_bytes // bytes_per_row)

    if S <= rows_per_block:
        ts = S                                                 # full S (always legal)
        tb = min(B, max(1, rows_per_block // S))
        if B >= 2:
            tb = min(tb, pl.cdiv(B, 2))                        # >= 2 batch blocks (v7x 2-TC)
    else:
        tb = 1
        ts = min(S, max(8, (rows_per_block // 8) * 8))         # multiple of 8 or == S

    # If everything still fits in a single block (only possible when B == 1),
    # split S so both TensorCores get work on v7x.
    if pl.cdiv(B, tb) * pl.cdiv(S, ts) < 2 and S >= 16:
        ts = max(8, (pl.cdiv(S, 2) // 8) * 8)
    return tb, ts


def ada_layer_norm(x, timestep, emb_table, w, bias,
                   *, target_block_bytes=4 * 1024 * 1024,
                   vmem_limit_bytes=48 * 1024 * 1024):
    """AdaLayerNorm forward.

    x: (B, S, D); timestep: (nt,) int32 with B % nt == 0.
    emb_table: (num_embeddings, D); w: (D, 2D) (PyTorch Linear weight, transposed);
    bias: (2D,).

    Performance contract: pad D to a multiple of 128 in the caller — D is never
    tiled, and lane-sparse D falls back to masked output stores.
    """
    B, S, D = x.shape
    nt = timestep.shape[0]
    assert B % nt == 0, "x.shape[0] must be a multiple of len(timestep)"
    r = B // nt

    # ---- Hoisted modulation path over the nt unique timesteps (tiny) ----
    e = emb_table[timestep].astype(jnp.float32)                  # (nt, D) gather
    silu = e * jax.nn.sigmoid(e)                                 # SiLU
    t = jnp.dot(silu, w.astype(jnp.float32),
                preferred_element_type=jnp.float32)              # (nt, 2D)
    t = t + bias.astype(jnp.float32)
    mod = jnp.stack([1.0 + t[:, :D], t[:, D:]], axis=1)          # (nt, 2, D)
    # einops 'b -> (b r)' == contiguous repeat; single cast to x.dtype.
    mod = jnp.repeat(mod, r, axis=0).astype(x.dtype)             # (B, 2, D)

    # ---- Tiling: dtype-aware, ~4 MiB lane-dense blocks, cdiv (ragged-safe) grid ----
    tb, ts = _choose_tiles(B, S, D, x.dtype.itemsize, target_block_bytes)
    grid = (pl.cdiv(B, tb), pl.cdiv(S, ts))

    return pl.pallas_call(
        _ada_layer_norm_kernel,
        out_shape=jax.ShapeDtypeStruct((B, S, D), x.dtype),
        grid=grid,
        in_specs=[
            pl.BlockSpec((tb, ts, D), lambda i, j: (i, j, 0)),   # x
            pl.BlockSpec((tb, 2, D), lambda i, j: (i, 0, 0)),    # [1+scale, shift]
        ],
        out_specs=pl.BlockSpec((tb, ts, D), lambda i, j: (i, j, 0)),
        compiler_params=pltpu.CompilerParams(
            dimension_semantics=("parallel", "parallel"),
            vmem_limit_bytes=vmem_limit_bytes),
    )(x, mod)


def reference(x, timestep, emb_table, w, bias):
    B, S, D = x.shape
    r = B // timestep.shape[0]
    ts = jnp.repeat(timestep, r)
    e = emb_table[ts].astype(jnp.float32)
    silu = e * jax.nn.sigmoid(e)
    t = silu @ w.astype(jnp.float32) + bias.astype(jnp.float32)
    scale, shift = t[:, None, :D], t[:, None, D:]
    xf = x.astype(jnp.float32)
    mean = xf.mean(-1, keepdims=True)
    var = ((xf - mean) ** 2).mean(-1, keepdims=True)
    xn = (xf - mean) * jax.lax.rsqrt(var + EPS)
    return (xn * (1.0 + scale) + shift).astype(x.dtype)


if __name__ == "__main__":
    # Small shapes consistent with the module.
    embedding_dim = 32       # D
    num_embeddings = 8
    b_time = 2               # len(timestep)
    r = 2
    B = b_time * r           # x.shape[0] (batch * frames)
    S = 8                    # tokens per frame

    key = jax.random.PRNGKey(0)
    k1, k2, k3, k4, k5 = jax.random.split(key, 5)

    # Deterministic parameter init (synthetic, not a checkpoint).
    emb_table = jax.random.normal(k1, (num_embeddings, embedding_dim), jnp.float32)
    # PyTorch Linear(D, 2D): weight (2D, D); stored transposed as (D, 2D).
    w = 0.1 * jax.random.normal(k2, (embedding_dim, 2 * embedding_dim), jnp.float32)
    bias = 0.1 * jax.random.normal(k3, (2 * embedding_dim,), jnp.float32)

    x = jax.random.normal(k4, (B, S, embedding_dim), jnp.float32)
    timestep = jax.random.randint(k5, (b_time,), 0, num_embeddings, jnp.int32)

    out = ada_layer_norm(x, timestep, emb_table, w, bias)
    out = jax.block_until_ready(out)

    ref = reference(x, timestep, emb_table, w, bias)
    assert out.shape == x.shape and out.dtype == x.dtype
    assert jnp.allclose(out, ref, atol=5e-5, rtol=5e-5), "mismatch vs reference"

    print("KERNEL_OK")
</pallas_src>

<mosaic_0001>
module attributes {stable_mosaic.version = 11 : i64} {
  func.func @_ada_layer_norm_kernel(%arg0: i32, %arg1: i32, %arg2: memref<2x8x32xf32, #tpu.memory_space<vmem>>, %arg3: memref<2x2x32xf32, #tpu.memory_space<vmem>>, %arg4: memref<2x8x32xf32, #tpu.memory_space<vmem>>) attributes {dimension_semantics = [#tpu.dimension_semantics<parallel>, #tpu.dimension_semantics<parallel>], iteration_bounds = array<i64: 2, 1>, scalar_prefetch = 0 : i64, scratch_operands = 0 : i64, tpu.core_type = #tpu.core_type<tc>, window_params = [{transform_indices = @transform_0, window_bounds = array<i64: 2, 8, 32>}, {transform_indices = @transform_1, window_bounds = array<i64: 2, 2, 32>}, {transform_indices = @transform_2, window_bounds = array<i64: 2, 8, 32>}]} {
    %c0 = arith.constant 0 : index
    %c0_0 = arith.constant 0 : index
    %c0_1 = arith.constant 0 : index
    %0 = vector.load %arg2[%c0, %c0_0, %c0_1] : memref<2x8x32xf32, #tpu.memory_space<vmem>>, vector<2x8x32xf32>
    %cst = arith.constant dense<0.000000e+00> : vector<2x8xf32>
    %1 = vector.multi_reduction <add>, %0, %cst [2] : vector<2x8x32xf32> to vector<2x8xf32>
    %2 = vector.shape_cast %1 : vector<2x8xf32> to vector<2x8x1xf32>
    %3 = arith.mulf %0, %0 : vector<2x8x32xf32>
    %cst_2 = arith.constant dense<0.000000e+00> : vector<2x8xf32>
    %4 = vector.multi_reduction <add>, %3, %cst_2 [2] : vector<2x8x32xf32> to vector<2x8xf32>
    %5 = vector.shape_cast %4 : vector<2x8xf32> to vector<2x8x1xf32>
    %cst_3 = arith.constant 3.125000e-02 : f32
    %6 = vector.broadcast %cst_3 : f32 to vector<2x8x1xf32>
    %7 = arith.mulf %2, %6 : vector<2x8x1xf32>
    %cst_4 = arith.constant 3.125000e-02 : f32
    %8 = vector.broadcast %cst_4 : f32 to vector<2x8x1xf32>
    %9 = arith.mulf %5, %8 : vector<2x8x1xf32>
    %10 = arith.mulf %7, %7 : vector<2x8x1xf32>
    %11 = arith.subf %9, %10 : vector<2x8x1xf32>
    %cst_5 = arith.constant 0.000000e+00 : f32
    %12 = vector.broadcast %cst_5 : f32 to vector<2x8x1xf32>
    %13 = arith.maximumf %11, %12 : vector<2x8x1xf32>
    %cst_6 = arith.constant 9.99999974E-6 : f32
    %14 = vector.broadcast %cst_6 : f32 to vector<2x8x1xf32>
    %15 = arith.addf %13, %14 : vector<2x8x1xf32>
    %16 = math.rsqrt %15 : vector<2x8x1xf32>
    %c0_7 = arith.constant 0 : index
    %c0_8 = arith.constant 0 : index
    %c0_9 = arith.constant 0 : index
    %17 = vector.load %arg3[%c0_7, %c0_8, %c0_9] : memref<2x2x32xf32, #tpu.memory_space<vmem>>, vector<2x1x32xf32>
    %c0_10 = arith.constant 0 : index
    %c1 = arith.constant 1 : index
    %c0_11 = arith.constant 0 : index
    %18 = vector.load %arg3[%c0_10, %c1, %c0_11] : memref<2x2x32xf32, #tpu.memory_space<vmem>>, vector<2x1x32xf32>
    %19 = vector.broadcast %7 : vector<2x8x1xf32> to vector<2x8x32xf32>
    %20 = arith.subf %0, %19 : vector<2x8x32xf32>
    %21 = vector.broadcast %16 : vector<2x8x1xf32> to vector<2x8x32xf32>
    %22 = arith.mulf %20, %21 : vector<2x8x32xf32>
    %23 = vector.broadcast %17 : vector<2x1x32xf32> to vector<2x8x32xf32>
    %24 = arith.mulf %22, %23 : vector<2x8x32xf32>
    %25 = vector.broadcast %18 : vector<2x1x32xf32> to vector<2x8x32xf32>
    %26 = arith.addf %24, %25 : vector<2x8x32xf32>
    %c0_12 = arith.constant 0 : index
    %c0_13 = arith.constant 0 : index
    %c0_14 = arith.constant 0 : index
    %27 = vector.load %arg4[%c0_12, %c0_13, %c0_14] : memref<2x8x32xf32, #tpu.memory_space<vmem>>, vector<2x8x32xf32>
    tpu.vector_store %arg4[%c0_12, %c0_13, %c0_14], %26 {strides = array<i32>} : memref<2x8x32xf32, #tpu.memory_space<vmem>>, vector<2x8x32xf32>,
    return
  }
  func.func @transform_0(%arg0: i32, %arg1: i32) -> (i32, i32, i32) {
    %c0_i32 = arith.constant 0 : i32
    %c0_i32_0 = arith.constant 0 : i32
    return %arg0, %arg1, %c0_i32 : i32, i32, i32
  }
  func.func @transform_1(%arg0: i32, %arg1: i32) -> (i32, i32, i32) {
    %c0_i32 = arith.constant 0 : i32
    %c0_i32_0 = arith.constant 0 : i32
    %c0_i32_1 = arith.constant 0 : i32
    return %arg0, %c0_i32, %c0_i32_0 : i32, i32, i32
  }
  func.func @transform_2(%arg0: i32, %arg1: i32) -> (i32, i32, i32) {
    %c0_i32 = arith.constant 0 : i32
    %c0_i32_0 = arith.constant 0 : i32
    return %arg0, %arg1, %c0_i32 : i32, i32, i32
  }
}

</mosaic_0001>

<bundles_post_ra>
// kernel: tpu_custom_call.1
= control target key start
LH: loop header
LB: loop body
LE: loop exit
PB: predicated region body
PF: predicated region fallthrough
CT: control target
= control target key end

     0   :  { %s850_s0 = inlined_call_operand.hbm [shape: f32[4,8,32], index: 0, kind: input, shape index: {}]   ;;  %s851_s1 = inlined_call_operand.hbm [shape: f32[4,2,32], index: 1, kind: input, shape index: {}]   ;;  %s852_s2 = inlined_call_operand.hbm [shape: f32[4,8,32], index: 2, kind: output, shape index: {}]  }
   0x1   :  { %853 = sst [smem:[#allocation11_spill]] %s850_s0 }
   0x2   :  { %7 = vsyncpa [#allocation3], 0 }
   0x3   :  { %9 = vsyncpa [#allocation3 + $0x1], 0 }
   0x4   :  { %10 = vsyncpa [#allocation6], 0 }
   0x5   :  { %12 = vsyncpa [#allocation6 + $0x1], 0 }
   0x6   :  { %13 = vsyncpa [#allocation4], 0 }
   0x7   :  { %15 = vsyncpa [#allocation4 + $0x1], 0  ;;  %s690_s9 = smov 0   ;;  %s692_s10 = smov 0  }
   0x8   :  { %s694_s11 = smov 0   ;;  %s696_s12 = smov 0  }
   0x9   :  { %s698_s13 = smov 0   ;;  %s700_s14 = smov 0  }
   0xa LB: > { %s418_s15 = sadd.s32 4294967295, %s667_s14   ;;  %s419_s16 = sadd.s32 4294967294, %s667_s14   ;;  %s667_s14 = sphi %s700_s14, %s21_s14   ;;  %s663_s13 = sphi %s698_s13, %s864_s13   ;;  %s659_s12 = sphi %s696_s12, %s863_s12   ;;  %s655_s11 = sphi %s694_s11, %s862_s11   ;;  %s651_s10 = sphi %s692_s10, %s861_s10   ;;  %s647_s9 = sphi %s690_s9, %s860_s9  }
   0xb   : > { %s33_s17 = sadd.s32 1, %s663_s13  ;;  %s42_s18 = sadd.s32 1, %s655_s11 }
   0xc   : > { %p35_p0 = scmp.ge.s32.totalorder %s33_s17, 2  ;;  %p49_p1 = scmp.ne.s32.totalorder %s655_s11, %s651_s10 }
   0xd   : > { %p50_p2 = scmp.eq.s32.totalorder %s667_s14, 0  ;;  %p55_p3 = scmp.ne.s32.totalorder %s651_s10, %s647_s9 }
   0xe   : > { %s866_s17 = smov (%p35_p0, %s33_s17), 0  ;;  %p56_p5 = scmp.eq.s32.totalorder %s418_s15, 0 }
   0xf   : > { %p731_p4 = por %p50_p2, %p49_p1  ;;  %s37_s20 = ssub.s32 %s663_s13, %s866_s17 }
  0x10   : > { %p107_p6 = scmp.eq.s32.totalorder %s418_s15, 1  ;;  %p40_p7 = scmp.eq.s32.totalorder %s37_s20, 0 }
  0x11   : > { %p737_p8 = por %p56_p5, %p55_p3  ;;  %p113_p10 = scmp.eq.s32.totalorder %s419_s16, 1 }
  0x12   : > { %p741_p9 = por %p107_p6, %p49_p1  ;;  %p421_p12 = scmp.ge.s32.totalorder %s667_s14, 2 }
  0x13   : > { %s746_s23 = scalar_select %p40_p7, %s655_s11, %s42_s18  }
  0x14   : > { %p748_p11 = por %p113_p10, %p55_p3  ;;  %p457_p13 = scmp.lt.s32.totalorder %s667_s14, 2 }
  0x15   : > { %s755_s25 = sand.u32 1, %s655_s11   ;;  %s437_s27 = sshll.u32 %s663_s13, 4 }
  0x16   : > { %s422_s26 = sshll.u32 %s755_s25, 4  ;;  %s858_s0 = sld [smem:[#allocation11_spill]] }
  0x17   : > { %s137_s3 = scalar_lea.vmem [#allocation2], %s422_s26  ;;  %p764_p0 = pnand %p457_p13, %p731_p4 }
  0x18   : > { %s146_s4 = sshll.u32 %s137_s3, 4  ;;  %p428_p1 = scmp.ge.s32.totalorder %s667_s14, 1  ;;  %s147_s4 = int_to_ptr.vmem [resolvable:$true] %s146_s4 }
  0x19   : > { %s134_s7 = scalar_lea.sflag [#allocation3], %s755_s25  ;;  %s669_s8 = smov 128  }
  0x1a   : > { %s670_s15 = smov 8   ;;  %p176_p2 = scmp.lt.s32.totalorder %s667_s14, 3 }
  0x1b   : > { %s425_s16 = sshll.u32 %s755_s25, 2  ;;  %s438_s18 = sshll.u32 %s663_s13, 2 }
  0x1c   : > { %s143_s30 = scalar_lea.hbm %s858_s0, %s437_s27  ;;  %p177_p3 = pnand %p428_p1, %p176_p2 }
  0x1d   : > { %s144_s5 = sshll.u32 %s143_s30, 4  ;;  %s165_s19 = scalar_lea.hbm %s851_s1, %s438_s18  ;;  %s145_s5 = int_to_ptr.hbm [resolvable:$true] %s144_s5 }
  0x1e   : > { %449 = dma.hbm_to_vmem [thread:$0]  (!%p764_p0), %s145_s5, 256, %s147_s4, %s134_s7, %s669_s8, %s669_s8, %s670_s15  }
  0x1f   : > { %s160_s27 = scalar_lea.vmem [#allocation5], %s425_s16  ;;  %s166_s29 = sshll.u32 %s165_s19, 4  ;;  %s167_s29 = int_to_ptr.hbm [resolvable:$true] %s166_s29 }
  0x20   : > { %s168_s28 = sshll.u32 %s160_s27, 4  ;;  %s157_s30 = scalar_lea.sflag [#allocation6], %s755_s25  ;;  %s169_s28 = int_to_ptr.vmem [resolvable:$true] %s168_s28 }
  0x21   : > { %s671_s3 = smov 32   ;;  %s672_s0 = smov 2  }
  0x22   : > { %452 = dma.hbm_to_vmem [thread:$0]  (!%p764_p0), %s167_s29, 64, %s169_s28, %s157_s30, %s671_s3, %s671_s3, %s672_s0  }
  0x23   : > { %180 = sbr.rel (%p177_p3) target bundleno = 208 (0xd0), region = 28  ;;  %s782_s4 = sand.u32 (!%p177_p3), 1, %s651_s10  }
  0x24   : > { %s429_s5 = sshll.u32 (!%p177_p3), %s782_s4, 4  ;;  %s183_s7 = scalar_lea.sflag (!%p177_p3), [#allocation3], %s782_s4 }
  0x25   : > { %s186_s8 = scalar_lea.vmem (!%p177_p3), [#allocation2], %s429_s5 }
  0x28   : > { %634 = dma.done.wait (%p737_p8), %s183_s7, 256  }
  0x29   : > { %636 = vsyncadd (%p737_p8), %s183_s7, 4294967040  ;;  %s430_s0 = sshll.u32 %s782_s4, 2  ;;  %s193_s25 = scalar_lea.sflag [#allocation6], %s782_s4 }
  0x2a   : > { %s794_s6 = scalar_lea.vmem [#allocation5], %s430_s0 }
  0x2b   : > { %638 = dma.done.wait (%p737_p8), %s193_s25, 64  }
  0x2c   : > { %640 = vsyncadd (%p737_p8), %s193_s25, 4294967232  ;;  %vm228_vm0 = vcmask 261120   ;;  %v226_v0 = vld [vmem:[%s186_s8] sm:$0xff]  ;;  %v227_v3 = vld [vmem:[%s186_s8 + $0x8] sm:$0xff]  ;;  %s439_s21 = sshll.u32 %s659_s12, 4  ;;  %s222_s15 = scalar_lea.vmem [#allocation7], %s429_s5 }
  0x2d   : > { %v229_v1 = vsel %vm228_vm0, %v226_v0, 0.0  ;;  %v235_v2 = vmul.f32 %v226_v0, %v226_v0  ;;  %v236_v5 = vmul.f32 %v227_v3, %v227_v3  ;;  %v232_v6 = vsel %vm228_vm0, %v227_v3, 0.0  ;;  %v513_v32 = vld [vmem:[%s794_s6] ss:$0 sm:$0xff]  ;;  %v514_v35 = vld [vmem:[%s794_s6 + $0x1] ss:$0 sm:$0xff]  ;;  %s306_s20 = scalar_lea.hbm %s852_s2, %s439_s21 }
  0x2e   : > { %230 = vadd.xlane.f32.xlu0 %v229_v1  ;;  %v515_v44 = vld [vmem:[%s794_s6 + $0x2] ss:$0 sm:$0xff]  ;;  %v516_v46 = vld [vmem:[%s794_s6 + $0x3] ss:$0 sm:$0xff]  ;;  %s307_s12 = sshll.u32 %s222_s15, 4  ;;  %s309_s26 = sshll.u32 %s306_s20, 4  ;;  %s308_s12 = int_to_ptr.vmem [resolvable:$true] %s307_s12  ;;  %s310_s26 = int_to_ptr.hbm [resolvable:$true] %s309_s26 }
  0x2f   : > { %v237_v4 = vsel %vm228_vm0, %v235_v2, 0.0  ;;  %v240_v7 = vsel %vm228_vm0, %v236_v5, 0.0  ;;  %s294_s19 = scalar_lea.sflag [#allocation4], %s782_s4  ;;  %s595_s27 = sshra.s32 %s310_s26, 4  ;;  %s596_s27 = int_to_ptr.hbm [resolvable:$true] %s595_s27 }
  0x30   : > { %238 = vadd.xlane.f32.xlu1 %v237_v4  ;;  %s597_s28 = scalar_lea.hbm %s596_s27, 16  ;;  %s601_s3 = scalar_lea.hbm %s852_s2, 32 }
  0x31   : > { %p598_p4 = scmp.ne.s32.totalorder %s596_s27, %s597_s28  ;;  %p602_p7 = scmp.lt.s32.totalorder %s596_s27, %s852_s2 }
  0x32   : > { %p603_p8 = scmp.lt.s32.totalorder %s601_s3, %s597_s28 }
  0x33   : > { %p599_p5 = pnand %p598_p4, %p741_p9 }
  0x34   : > { %p604_p10 = por %p603_p8, %p602_p7 }
  0x35   : > { %p600_p6 = pneg %p599_p5 }
  0x36   : > { %233 = vadd.xlane.f32.xlu0 %v232_v6 }
  0x37   : > { %p605_p13 = pnand %p604_p10, %p600_p6 }
  0x38   : > { %241 = vadd.xlane.f32.xlu1 %v240_v7 }
  0xa1   : > { %v231_v8 = vpop.xlane.xlu0 %230 }
  0xa2   : > { %v243_v9 = vmul.f32 0.03125, %v231_v8 }
  0xa3   : > { %v239_v10 = vpop.xlane.xlu1 %238 }
  0xa4   : > { %v247_v11 = vmul.f32 %v243_v9, %v243_v9  ;;  %v245_v12 = vmul.f32 0.03125, %v239_v10  ;;  %v279_v31 = vsub.f32 %v226_v0, %v243_v9 }
  0xa6   : > { %v249_v13 = vsub.f32 %v245_v12, %v247_v11 }
  0xa8   : > { %v251_v14 = vmax.f32 %v249_v13, 0.0 }
  0xa9   : > { %v234_v15 = vpop.xlane.xlu0 %233 }
  0xaa   : > { %v253_v16 = vadd.f32 1e-05, %v251_v14  ;;  %v244_v17 = vmul.f32 0.03125, %v234_v15 }
  0xab   : > { %v242_v18 = vpop.xlane.xlu1 %241 }
  0xac   : > { %517 = vrsqrt.f32 %v253_v16  ;;  %v248_v19 = vmul.f32 %v244_v17, %v244_v17  ;;  %v246_v20 = vmul.f32 0.03125, %v242_v18  ;;  %vm261_vm2 = vweird.f32 %v253_v16 }
  0xad   : > { %v280_v43 = vsub.f32 %v227_v3, %v244_v17 }
  0xae   : > { %v250_v21 = vsub.f32 %v246_v20, %v248_v19 }
  0xb0   : > { %v252_v22 = vmax.f32 %v250_v21, 0.0 }
  0xb2   : > { %v518_v23 = vpop.eup %517  ;;  %v254_v25 = vadd.f32 1e-05, %v252_v22 }
  0xb3   : > { %v256_v24 = vmul.f32 %v518_v23, %v253_v16  ;;  %vm262_vm1 = vweird.f32 %v518_v23 }
  0xb4   : > { %519 = vrsqrt.f32 %v254_v25  ;;  %vm263_vm3 = vmor %vm261_vm2, %vm262_vm1  ;;  %vm271_vm5 = vweird.f32 %v254_v25 }
  0xb5   : > { %v257_v26 = vmul.f32 %v518_v23, %v256_v24 }
  0xb7   : > { %v258_v27 = vmul.f32 0.5, %v257_v26 }
  0xb9   : > { %v259_v28 = vsub.f32 1.5, %v258_v27 }
  0xba   : > { %v520_v29 = vpop.eup %519 }
  0xbb   : > { %v260_v30 = vmul.f32 %v518_v23, %v259_v28  ;;  %v266_v33 = vmul.f32 %v520_v29, %v254_v25  ;;  %vm272_vm4 = vweird.f32 %v520_v29 }
  0xbc   : > { %vm273_vm6 = vmor %vm271_vm5, %vm272_vm4 }
  0xbd   : > { %v264_v34 = vsel %vm263_vm3, %v518_v23, %v260_v30  ;;  %v267_v37 = vmul.f32 %v520_v29, %v266_v33 }
  0xbe   : > { %v281_v36 = vmul.f32 %v279_v31, %v264_v34 }
  0xbf   : > { %v268_v39 = vmul.f32 0.5, %v267_v37 }
  0xc0   : > { %v285_v38 = vmul.f32 %v513_v32, %v281_v36 }
  0xc1   : > { %v269_v41 = vsub.f32 1.5, %v268_v39 }
  0xc2   : > { %v289_v40 = vadd.f32 %v514_v35, %v285_v38 }
  0xc3   : > { %v270_v42 = vmul.f32 %v520_v29, %v269_v41 }
  0xc4   : > { %291 = vst.msk [vmem:[%s222_s15] sm:$0xff] %vm228_vm0, %v289_v40 }
  0xc5   : > { %v274_v45 = vsel %vm273_vm6, %v520_v29, %v270_v42 }
  0xc6   : > { %v282_v47 = vmul.f32 %v280_v43, %v274_v45 }
  0xc8   : > { %v286_v48 = vmul.f32 %v515_v44, %v282_v47 }
  0xca   : > { %v290_v49 = vadd.f32 %v516_v46, %v286_v48 }
  0xcc   : > { %292 = vst.msk [vmem:[%s222_s15 + $0x8] sm:$0xff] %vm228_vm0, %v290_v49 }
  0xcd   : > { %608 = shalt.err (!%p605_p13)
}
  0xce   : > { %s673_s4 = smov 128   ;;  %s674_s8 = smov 8  }
  0xcf   : > { %444 = dma.vmem_to_hbm [thread:$0]  (%p741_p9), %s308_s12, 256, %s310_s26, %s294_s19, %s673_s4, %s673_s4, %s674_s8  }
  0xd0 PF: > { %s324_s0 = sand.u32 1, %s647_s9   ;;  %p454_p0 = pnand %p421_p12, %p748_p11 }
  0xd1   : > { %s325_s25 = scalar_lea.sflag [#allocation4], %s324_s0 }
  0xd2   : > { %p455_p1 = pneg %p454_p0 }
  0xd4   : > { %642 = dma.done.wait (%p455_p1), %s325_s25, 256  }
  0xd5   : > { %644 = vsyncadd (%p455_p1), %s325_s25, 4294967040  ;;  %s21_s14 = sadd.s32 1, %s667_s14   ;;  %s860_s9 = smov %s651_s10 }
  0xd6   : > { %p18_p2 = scmp.ge.s32.totalorder %s21_s14, 4   ;;  %s861_s10 = smov %s655_s11 }
  0xd7   : > { %s862_s11 = smov %s746_s23  ;;  %s863_s12 = smov %s663_s13 }
  0xd8   : > { %s864_s13 = smov %s866_s17  ;;  %20 = sbr.rel (!%p18_p2) target bundleno = 10 (0xa), region = 86 }
  0xdd   :  { %331 = vsyncpa [#allocation3], 1 }
  0xde   :  { %333 = vsyncpa [#allocation3 + $0x1], 1 }
  0xdf   :  { %334 = vsyncpa [#allocation6], 1 }
  0xe0   :  { %336 = vsyncpa [#allocation6 + $0x1], 1 }
  0xe1   :  { %337 = vsyncpa [#allocation4], 1 }
  0xe2   :  { %339 = vsyncpa [#allocation4 + $0x1], 1 }

</bundles_post_ra>
